<compile_context>
chip_gen: v7x
topology: tpu7x:2x2x1
jax: 0.10.0
libtpu: 0.0.40
codegen_flags: <defaults>
</compile_context>

<pallas_src>
import functools

import jax
import jax.numpy as jnp
from jax import lax
from jax.experimental import pallas as pl
from jax.experimental.pallas import tpu as pltpu


def _round_up(x, m):
    return ((x + m - 1) // m) * m


def _vmem_limit_bytes():
    """Per-generation VMEM budget: 3/4 of physical, capped at 96 MiB."""
    phys = 64 * 1024 * 1024  # conservative fallback (v7x per-core VMEM)
    try:
        phys = int(pltpu.get_tpu_info().vmem_capacity_bytes)
    except Exception:
        pass
    return int(min(phys * 3 // 4, 96 * 1024 * 1024))


def _choose_tile_p(C, hw_l, logits_itemsize, w_itemsize, vmem_limit):
    """Pick the pixel-tile (lane) width from the VMEM budget and class count."""
    # Per-lane VMEM bytes of one grid step: double-buffered logits / target /
    # weight blocks plus ~3 f32 (C, TILE_P)-sized elementwise temporaries.
    per_lane = (2 * C * logits_itemsize      # logits block, double buffered
                + 2 * (4 + w_itemsize)       # int32 targets + pixel weights
                + 3 * C * 4                  # exp / select / convert temps
                + 32)                        # (1, TILE_P) f32 rows
    budget = int(0.55 * vmem_limit) // per_lane
    if budget >= 512:
        tp = 512
        while tp * 2 <= budget and tp * 2 <= 65536:
            tp *= 2                          # power of two -> clean tree fold
    else:
        tp = 128
    return max(128, min(tp, hw_l))


def _lane_fold(pw, acc_lanes):
    """Fold a (1, TILE_P) f32 row to (1, acc_lanes) with a log2 add tree.

    Only lane-aligned static slices + VPU adds; the serial dependency chain is
    O(log2(TILE_P / acc_lanes)) instead of O(TILE_P / 128).
    """
    width = pw.shape[-1]
    while width > acc_lanes and width % (2 * acc_lanes) == 0:
        half = width // 2
        pw = pw[:, :half] + pw[:, half:width]
        width = half
    folded = pw[:, :acc_lanes]
    for k in range(1, width // acc_lanes):   # rare non-power-of-two remainder
        folded = folded + pw[:, k * acc_lanes:(k + 1) * acc_lanes]
    return folded


def _ce_weighted_partial_kernel(logits_ref, tgt_ref, w_ref, out_ref, *,
                                ignore_index, acc_lanes, compute_dtype):
    """One lane-dense (C, TILE_P) tile of one (sample, split) pair.

    Accumulates weighted per-pixel CE into a resident (1, acc_lanes) lane
    accumulator.  The final cross-lane reduce and the division by N*H*W are
    deferred to the wrapper.
    """
    pb = pl.program_id(2)

    @pl.when(pb == 0)
    def _():
        out_ref[...] = jnp.zeros_like(out_ref)

    x = logits_ref[...]                       # (C, TP), classes on sublanes
    if x.dtype != compute_dtype:              # no materialized cast for f32/f32
        x = x.astype(compute_dtype)
    t = tgt_ref[...]                          # (1, TP) int32
    w = w_ref[...].astype(jnp.float32)        # (1, TP)

    # Stable log-sum-exp over the class (sublane) axis.  Elementwise work and
    # exp stay in `compute_dtype`; the class-axis accumulation is f32.
    m = jnp.max(x, axis=0, keepdims=True)                                 # (1, TP)
    sumexp = jnp.sum(jnp.exp(x - m), axis=0, keepdims=True,
                     dtype=jnp.float32)                                   # (1, TP)
    lse = m.astype(jnp.float32) + jnp.log(sumexp)                         # (1, TP)

    # Target-class logit via a one-hot compare (no dynamic gather on TPU).
    cls = lax.broadcasted_iota(jnp.int32, x.shape, 0)                     # (C, TP)
    x_t = jnp.sum(jnp.where(cls == t, x, 0), axis=0, keepdims=True,
                  dtype=jnp.float32)                                      # (1, TP)

    # ignore_index pixels and padded / duplicated-tail lanes carry
    # target == ignore_index (and weight 0): the *select* yields exactly 0, so
    # garbage (even NaN) in out-of-range logits lanes cannot leak through.
    valid = t != ignore_index
    pw = jnp.where(valid, lse - x_t, 0.0) * w                             # (1, TP)

    out_ref[...] += _lane_fold(pw, acc_lanes)


def pixelwise_weighted_ce_loss(logits, target, pixel_weight, *,
                               ignore_index=255, tile_p=None,
                               bf16_compute=True):
    """logits: (N, C, H, W) float; target: (N, H, W) int; pixel_weight: (N, H, W) float."""
    N, C, H, W = logits.shape
    HW = H * W
    P = N * HW

    # Free reshapes only: NCHW is already class-major per sample.
    x = logits.reshape(N, C, HW)
    t = target.reshape(N, 1, HW).astype(jnp.int32)
    w = pixel_weight.reshape(N, 1, HW)

    # Lane granularity is 128.  Pad the big logits array ONLY when H*W is
    # ragged (rare); typical segmentation shapes take the copy-free path.
    hw_l = _round_up(HW, 128)
    if hw_l != HW:
        x = jnp.pad(x, ((0, 0), (0, 0), (0, hw_l - HW)))

    vmem_limit = _vmem_limit_bytes()
    if tile_p is None:
        tile_p = _choose_tile_p(C, hw_l, logits.dtype.itemsize,
                                pixel_weight.dtype.itemsize, vmem_limit)
    else:
        tile_p = max(128, min(_round_up(tile_p, 128), hw_l))

    acc_lanes = 512 if tile_p % 512 == 0 else (256 if tile_p % 256 == 0 else 128)

    nb = pl.cdiv(hw_l, tile_p)        # real logits pixel blocks per sample
    split = 2 if nb >= 2 else 1       # keep both v7x TensorCores busy at N == 1
    bps = pl.cdiv(nb, split)          # pixel blocks per split chunk
    hw_pad = split * bps * tile_p     # grid pixel extent (targets / weights)

    # Pad ONLY the tiny target / weight arrays (ignore_index / 0) to the full
    # grid extent, so ragged tails and the duplicated tail block contribute 0.
    if hw_pad != HW:
        t = jnp.pad(t, ((0, 0), (0, 0), (0, hw_pad - HW)),
                    constant_values=ignore_index)
        w = jnp.pad(w, ((0, 0), (0, 0), (0, hw_pad - HW)))

    compute_dtype = (jnp.bfloat16
                     if (bf16_compute and logits.dtype == jnp.bfloat16)
                     else jnp.float32)

    kernel = functools.partial(_ce_weighted_partial_kernel,
                               ignore_index=ignore_index,
                               acc_lanes=acc_lanes,
                               compute_dtype=compute_dtype)

    def logits_map(n, s, p):
        # Clamp so the (rare) duplicated tail block when `nb` is odd stays in
        # bounds; its targets are ignore_index-padded, so it adds exactly 0.
        return (n, 0, jnp.minimum(s * bps + p, nb - 1))

    def tw_map(n, s, p):
        return (n, 0, s * bps + p)

    cost = pl.CostEstimate(
        flops=6 * P * C,
        transcendentals=P * C + P,
        bytes_accessed=(N * C * hw_l * logits.dtype.itemsize
                        + N * hw_pad * (4 + pixel_weight.dtype.itemsize)
                        + N * split * acc_lanes * 4))

    # NOTE: if tile_p ends up small (large C on v7x), pipeline_mode=
    # pl.Buffered(3) on the logits spec is a cheap extra knob to sweep.
    partials = pl.pallas_call(
        kernel,
        out_shape=jax.ShapeDtypeStruct((N, split, 1, acc_lanes), jnp.float32),
        grid_spec=pltpu.PrefetchScalarGridSpec(
            num_scalar_prefetch=0,
            grid=(N, split, bps),
            in_specs=[
                pl.BlockSpec((None, C, tile_p), logits_map),
                pl.BlockSpec((None, 1, tile_p), tw_map),
                pl.BlockSpec((None, 1, tile_p), tw_map),
            ],
            out_specs=pl.BlockSpec((None, None, 1, acc_lanes),
                                   lambda n, s, p: (n, s, 0, 0)),
        ),
        compiler_params=pltpu.CompilerParams(
            # Per-(sample, split) output blocks => both leading axes are
            # race-free "parallel" (uses both TensorCores on v7x); the pixel
            # axis reduces into the resident output block -> "arbitrary".
            dimension_semantics=("parallel", "parallel", "arbitrary"),
            vmem_limit_bytes=vmem_limit),
        cost_estimate=cost,
    )(x, t, w)

    # torch.mean divides by ALL N*H*W pixels (ignored pixels included).
    return jnp.sum(partials) / jnp.float32(P)


def _reference_loss(logits, target, pixel_weight, ignore_index=255):
    """Pure-JAX reference mirroring F.cross_entropy(..., reduction='none')."""
    x = jnp.transpose(logits, (0, 2, 3, 1)).astype(jnp.float32)  # (N,H,W,C)
    logz = jax.nn.logsumexp(x, axis=-1)
    t = target.astype(jnp.int32)
    safe_t = jnp.where(t == ignore_index, 0, t)
    x_t = jnp.take_along_axis(x, safe_t[..., None], axis=-1)[..., 0]
    loss = jnp.where(t == ignore_index, 0.0, logz - x_t)
    return jnp.mean(loss * pixel_weight.astype(jnp.float32))


def _make_inputs(key, N, C, H, W, ignore_index):
    k1, k2, k3, k4 = jax.random.split(key, 4)
    logits = jax.random.normal(k1, (N, C, H, W), dtype=jnp.float32)
    target = jax.random.randint(k2, (N, H, W), 0, C, dtype=jnp.int32)
    ignore_mask = jax.random.uniform(k3, (N, H, W)) < 0.1
    target = jnp.where(ignore_mask, ignore_index, target)
    pixel_weight = jax.random.uniform(k4, (N, H, W), dtype=jnp.float32)
    return logits, target, pixel_weight


if __name__ == "__main__":
    ignore_index = 255
    key = jax.random.PRNGKey(0)
    keys = jax.random.split(key, 3)

    # (name, (N, C, H, W), explicit tile_p override or None)
    cases = [
        ("base", (2, 4, 16, 16), None),      # divisible H*W, adaptive tile
        ("hw_lt_128", (1, 3, 10, 10), None), # H*W < 128 (padded ragged path)
        ("multi_block_odd", (1, 4, 16, 80), 256),  # 5 pixel blocks -> split=2
    ]

    for (name, (N, C, H, W), tp), k in zip(cases, keys):
        logits, target, pixel_weight = _make_inputs(k, N, C, H, W, ignore_index)
        out = pixelwise_weighted_ce_loss(logits, target, pixel_weight,
                                         ignore_index=ignore_index, tile_p=tp)
        out = jax.block_until_ready(out)
        ref = _reference_loss(logits, target, pixel_weight,
                              ignore_index=ignore_index)
        assert jnp.allclose(out, ref, rtol=1e-4, atol=1e-5), (name, out, ref)

    print("KERNEL_OK")
</pallas_src>

<mosaic_0001>
module attributes {stable_mosaic.version = 11 : i64} {
  func.func @_ce_weighted_partial_kernel(%arg0: i32, %arg1: i32, %arg2: i32, %arg3: memref<1x4x256xf32, #tpu.memory_space<vmem>>, %arg4: memref<1x1x256xi32, #tpu.memory_space<vmem>>, %arg5: memref<1x1x256xf32, #tpu.memory_space<vmem>>, %arg6: memref<1x1x1x256xf32, #tpu.memory_space<vmem>>) attributes {dimension_semantics = [#tpu.dimension_semantics<parallel>, #tpu.dimension_semantics<parallel>, #tpu.dimension_semantics<arbitrary>], iteration_bounds = array<i64: 2, 1, 1>, scalar_prefetch = 0 : i64, scratch_operands = 0 : i64, tpu.core_type = #tpu.core_type<tc>, window_params = [{transform_indices = @transform_0, window_bounds = array<i64: 1, 4, 256>}, {transform_indices = @transform_1, window_bounds = array<i64: 1, 1, 256>}, {transform_indices = @transform_2, window_bounds = array<i64: 1, 1, 256>}, {transform_indices = @transform_3, window_bounds = array<i64: 1, 1, 1, 256>}]} {
    %c0_i32 = arith.constant 0 : i32
    %0 = arith.cmpi eq, %arg2, %c0_i32 : i32
    %1 = arith.extui %0 : i1 to i32
    %c0_i32_0 = arith.constant 0 : i32
    %2 = arith.cmpi ne, %1, %c0_i32_0 : i32
    scf.if %2 {
      %cst_21 = arith.constant 0.000000e+00 : f32
      %38 = vector.broadcast %cst_21 : f32 to vector<1x256xf32>
      %c0_22 = arith.constant 0 : index
      %c0_23 = arith.constant 0 : index
      %c0_24 = arith.constant 0 : index
      %c0_25 = arith.constant 0 : index
      %39 = vector.load %arg6[%c0_22, %c0_23, %c0_24, %c0_25] : memref<1x1x1x256xf32, #tpu.memory_space<vmem>>, vector<1x1x1x256xf32>
      %40 = vector.shape_cast %39 : vector<1x1x1x256xf32> to vector<1x256xf32>
      %41 = vector.shape_cast %38 : vector<1x256xf32> to vector<1x1x1x256xf32>
      tpu.vector_store %arg6[%c0_22, %c0_23, %c0_24, %c0_25], %41 {strides = array<i32>} : memref<1x1x1x256xf32, #tpu.memory_space<vmem>>, vector<1x1x1x256xf32>,
    } else {
    }
    %c0 = arith.constant 0 : index
    %c0_1 = arith.constant 0 : index
    %c0_2 = arith.constant 0 : index
    %3 = vector.load %arg3[%c0, %c0_1, %c0_2] : memref<1x4x256xf32, #tpu.memory_space<vmem>>, vector<1x4x256xf32>
    %4 = vector.shape_cast %3 : vector<1x4x256xf32> to vector<4x256xf32>
    %c0_3 = arith.constant 0 : index
    %c0_4 = arith.constant 0 : index
    %c0_5 = arith.constant 0 : index
    %5 = vector.load %arg4[%c0_3, %c0_4, %c0_5] : memref<1x1x256xi32, #tpu.memory_space<vmem>>, vector<1x1x256xi32>
    %6 = vector.shape_cast %5 : vector<1x1x256xi32> to vector<1x256xi32>
    %c0_6 = arith.constant 0 : index
    %c0_7 = arith.constant 0 : index
    %c0_8 = arith.constant 0 : index
    %7 = vector.load %arg5[%c0_6, %c0_7, %c0_8] : memref<1x1x256xf32, #tpu.memory_space<vmem>>, vector<1x1x256xf32>
    %8 = vector.shape_cast %7 : vector<1x1x256xf32> to vector<1x256xf32>
    %cst = arith.constant dense<0xFF800000> : vector<256xf32>
    %9 = vector.multi_reduction <maximumf>, %4, %cst [0] : vector<4x256xf32> to vector<256xf32>
    %10 = vector.shape_cast %9 : vector<256xf32> to vector<1x256xf32>
    %11 = vector.broadcast %10 : vector<1x256xf32> to vector<4x256xf32>
    %12 = arith.subf %4, %11 : vector<4x256xf32>
    %13 = math.exp %12 : vector<4x256xf32>
    %cst_9 = arith.constant dense<0.000000e+00> : vector<256xf32>
    %14 = vector.multi_reduction <add>, %13, %cst_9 [0] : vector<4x256xf32> to vector<256xf32>
    %15 = vector.shape_cast %14 : vector<256xf32> to vector<1x256xf32>
    %16 = math.log %15 : vector<1x256xf32>
    %17 = arith.addf %10, %16 : vector<1x256xf32>
    %18 = tpu.iota {dimensions = array<i32: 0>} : vector<4x256xi32>
    %19 = vector.broadcast %6 : vector<1x256xi32> to vector<4x256xi32>
    %20 = arith.cmpi eq, %18, %19 : vector<4x256xi32>
    %c0_i32_10 = arith.constant 0 : i32
    %21 = arith.sitofp %c0_i32_10 : i32 to f32
    %22 = vector.broadcast %21 : f32 to vector<4x256xf32>
    %23 = arith.select %20, %4, %22 : vector<4x256xi1>, vector<4x256xf32>
    %cst_11 = arith.constant dense<0.000000e+00> : vector<256xf32>
    %24 = vector.multi_reduction <add>, %23, %cst_11 [0] : vector<4x256xf32> to vector<256xf32>
    %25 = vector.shape_cast %24 : vector<256xf32> to vector<1x256xf32>
    %c255_i32 = arith.constant 255 : i32
    %26 = vector.broadcast %c255_i32 : i32 to vector<1x256xi32>
    %27 = arith.cmpi ne, %6, %26 : vector<1x256xi32>
    %28 = arith.subf %17, %25 : vector<1x256xf32>
    %cst_12 = arith.constant 0.000000e+00 : f32
    %29 = vector.broadcast %cst_12 : f32 to vector<1x256xf32>
    %30 = arith.select %27, %28, %29 : vector<1x256xi1>, vector<1x256xf32>
    %31 = arith.mulf %30, %8 : vector<1x256xf32>
    %c0_13 = arith.constant 0 : index
    %c0_14 = arith.constant 0 : index
    %c0_15 = arith.constant 0 : index
    %c0_16 = arith.constant 0 : index
    %32 = vector.load %arg6[%c0_13, %c0_14, %c0_15, %c0_16] : memref<1x1x1x256xf32, #tpu.memory_space<vmem>>, vector<1x1x1x256xf32>
    %33 = vector.shape_cast %32 : vector<1x1x1x256xf32> to vector<1x256xf32>
    %34 = arith.addf %33, %31 : vector<1x256xf32>
    %c0_17 = arith.constant 0 : index
    %c0_18 = arith.constant 0 : index
    %c0_19 = arith.constant 0 : index
    %c0_20 = arith.constant 0 : index
    %35 = vector.load %arg6[%c0_17, %c0_18, %c0_19, %c0_20] : memref<1x1x1x256xf32, #tpu.memory_space<vmem>>, vector<1x1x1x256xf32>
    %36 = vector.shape_cast %35 : vector<1x1x1x256xf32> to vector<1x256xf32>
    %37 = vector.shape_cast %34 : vector<1x256xf32> to vector<1x1x1x256xf32>
    tpu.vector_store %arg6[%c0_17, %c0_18, %c0_19, %c0_20], %37 {strides = array<i32>} : memref<1x1x1x256xf32, #tpu.memory_space<vmem>>, vector<1x1x1x256xf32>,
    return
  }
  func.func @transform_0(%arg0: i32, %arg1: i32, %arg2: i32) -> (i32, i32, i32) {
    %c1_i32 = arith.constant 1 : i32
    %0 = arith.muli %arg1, %c1_i32 : i32
    %1 = arith.addi %0, %arg2 : i32
    %c0_i32 = arith.constant 0 : i32
    %2 = arith.minsi %1, %c0_i32 : i32
    %c0_i32_0 = arith.constant 0 : i32
    %c0_i32_1 = arith.constant 0 : i32
    return %arg0, %c0_i32_0, %2 : i32, i32, i32
  }
  func.func @transform_1(%arg0: i32, %arg1: i32, %arg2: i32) -> (i32, i32, i32) {
    %c1_i32 = arith.constant 1 : i32
    %0 = arith.muli %arg1, %c1_i32 : i32
    %1 = arith.addi %0, %arg2 : i32
    %c0_i32 = arith.constant 0 : i32
    %c0_i32_0 = arith.constant 0 : i32
    return %arg0, %c0_i32, %1 : i32, i32, i32
  }
  func.func @transform_2(%arg0: i32, %arg1: i32, %arg2: i32) -> (i32, i32, i32) {
    %c1_i32 = arith.constant 1 : i32
    %0 = arith.muli %arg1, %c1_i32 : i32
    %1 = arith.addi %0, %arg2 : i32
    %c0_i32 = arith.constant 0 : i32
    %c0_i32_0 = arith.constant 0 : i32
    return %arg0, %c0_i32, %1 : i32, i32, i32
  }
  func.func @transform_3(%arg0: i32, %arg1: i32, %arg2: i32) -> (i32, i32, i32, i32) {
    %c0_i32 = arith.constant 0 : i32
    %c0_i32_0 = arith.constant 0 : i32
    %c0_i32_1 = arith.constant 0 : i32
    return %arg0, %arg1, %c0_i32, %c0_i32_0 : i32, i32, i32, i32
  }
}

</mosaic_0001>

<bundles_post_ra>
// kernel: tpu_custom_call.1
= control target key start
LH: loop header
LB: loop body
LE: loop exit
PB: predicated region body
PF: predicated region fallthrough
CT: control target
= control target key end

     0   :  { %8 = vsyncpa [#allocation3], 0  ;;  %s1093_s0 = inlined_call_operand.hbm [shape: f32[2,4,256], index: 0, kind: input, shape index: {}]   ;;  %s1094_s1 = inlined_call_operand.hbm [shape: s32[2,1,256], index: 1, kind: input, shape index: {}]   ;;  %s1095_s2 = inlined_call_operand.vmem [shape: f32[2,1,256], index: 2, kind: input, shape index: {}]   ;;  %s1096_s3 = inlined_call_operand.hbm [shape: f32[2,1,1,256], index: 3, kind: output, shape index: {}]  }
   0x1   :  { %10 = vsyncpa [#allocation3 + $0x1], 0 }
   0x2   :  { %11 = vsyncpa [#allocation6], 0 }
   0x3   :  { %13 = vsyncpa [#allocation6 + $0x1], 0 }
   0x4   :  { %14 = vsyncpa [#allocation4], 0 }
   0x5   :  { %16 = vsyncpa [#allocation4 + $0x1], 0  ;;  %s848_s12 = smov 0   ;;  %s850_s13 = smov 0  }
   0x6   :  { %s852_s14 = smov 0   ;;  %s854_s15 = smov 0  }
   0x7   :  { %s856_s16 = smov 0   ;;  %s858_s17 = smov 0  }
   0x8 LB: > { %s576_s18 = sadd.s32 4294967295, %s821_s17   ;;  %s577_s19 = sadd.s32 4294967294, %s821_s17   ;;  %s821_s17 = sphi %s858_s17, %s22_s17   ;;  %s817_s16 = sphi %s856_s16, %s1118_s16   ;;  %s813_s15 = sphi %s854_s15, %s1117_s15   ;;  %s809_s14 = sphi %s852_s14, %s1116_s14   ;;  %s805_s13 = sphi %s850_s13, %s1115_s13   ;;  %s801_s12 = sphi %s848_s12, %s1114_s12  }
   0x9   : > { %s41_s20 = sadd.s32 1, %s817_s16  ;;  %s56_s21 = sadd.s32 1, %s809_s14 }
   0xa   : > { %p43_p0 = scmp.ge.s32.totalorder %s41_s20, 2  ;;  %p63_p1 = scmp.ne.s32.totalorder %s809_s14, %s805_s13 }
   0xb   : > { %p64_p2 = scmp.eq.s32.totalorder %s821_s17, 0  ;;  %p69_p3 = scmp.ne.s32.totalorder %s805_s13, %s801_s12 }
   0xc   : > { %s1120_s20 = smov (%p43_p0, %s41_s20), 0  ;;  %p70_p5 = scmp.eq.s32.totalorder %s576_s18, 0 }
   0xd   : > { %p889_p4 = por %p64_p2, %p63_p1  ;;  %s51_s23 = ssub.s32 %s817_s16, %s1120_s20 }
   0xe   : > { %p155_p6 = scmp.eq.s32.totalorder %s576_s18, 1  ;;  %p54_p7 = scmp.eq.s32.totalorder %s51_s23, 0 }
   0xf   : > { %p895_p8 = por %p70_p5, %p69_p3  ;;  %p161_p10 = scmp.eq.s32.totalorder %s577_s19, 1 }
  0x10   : > { %p899_p9 = por %p155_p6, %p63_p1  ;;  %p616_p13 = scmp.lt.s32.totalorder %s821_s17, 2 }
  0x11   : > { %s1100_s24 = scalar_select %p895_p8, 1, 0 }
  0x12   : > { %s1101_s25 = scalar_select %p899_p9, 1, 0 }
  0x13   : > { %s904_s26 = scalar_select %p54_p7, %s809_s14, %s56_s21  }
  0x14   : > { %p906_p11 = por %p161_p10, %p69_p3  ;;  %s913_s28 = sand.u32 1, %s809_s14  }
  0x15   : > { %s580_s29 = sshll.u32 %s913_s28, 3  ;;  %s596_s30 = sshll.u32 %s817_s16, 7 }
  0x16   : > { %s1102_s27 = scalar_select %p906_p11, 1, 0 }
  0x17   : > { %s920_s6 = scalar_lea.hbm %s1093_s0, %s596_s30  ;;  %s185_s7 = scalar_lea.vmem [#allocation2], %s580_s29 }
  0x18   : > { %s198_s8 = sshll.u32 %s185_s7, 4  ;;  %p926_p0 = pnand %p616_p13, %p889_p4  ;;  %s922_s8 = int_to_ptr.vmem [resolvable:$true] %s198_s8 }
  0x19   : > { %s182_s10 = scalar_lea.sflag [#allocation3], %s913_s28  ;;  %s675_s11 = scalar_lea.hbm %s920_s6, 128 }
  0x1a   : > { %p676_p3 = scmp.ne.s32.totalorder %s920_s6, %s675_s11  ;;  %p677_p5 = pneg %p926_p0 }
  0x1b   : > { %s680_s21 = scalar_lea.hbm %s1093_s0, 256  ;;  %p681_p4 = scmp.lt.u32.totalorder %s920_s6, %s1093_s0 }
  0x1c   : > { %p678_p6 = pnand %p677_p5, %p676_p3  ;;  %p682_p10 = scmp.lt.u32.totalorder %s680_s21, %s675_s11 }
  0x1d   : > { %p684_p12 = scmp.lt.u32.totalorder %s675_s11, %s920_s6 }
  0x1e   : > { %p679_p7 = pneg %p678_p6  ;;  %p683_p13 = por %p682_p10, %p681_p4 }
  0x20   : > { %p685_p1 = por %p684_p12, %p683_p13 }
  0x22   : > { %p686_p2 = pnand %p685_p1, %p679_p7 }
  0x24   : > { %689 = shalt.err (!%p686_p2)
}
  0x25   : > { %s690_s29 = scalar_lea.vmem %s922_s8, 128  ;;  %s823_s30 = smov [#allocation2]  }
  0x26   : > { %p691_p3 = scmp.ne.s32.totalorder %s922_s8, %s690_s29  ;;  %s695_s4 = sshll.u32 %s823_s30, 4  ;;  %s696_s4 = int_to_ptr.vmem [resolvable:$false] %s695_s4 }
  0x27   : > { %s697_s5 = scalar_lea.vmem %s696_s4, 256  ;;  %p698_p9 = scmp.lt.s32.totalorder %s922_s8, %s696_s4 }
  0x28   : > { %p693_p6 = pnand %p691_p3, %p677_p5  ;;  %p699_p4 = scmp.lt.s32.totalorder %s697_s5, %s690_s29 }
  0x2a   : > { %p694_p11 = pneg %p693_p6  ;;  %p700_p10 = por %p699_p4, %p698_p9 }
  0x2c   : > { %p701_p12 = pnand %p700_p10, %p694_p11 }
  0x2e   : > { %704 = shalt.err (!%p701_p12)
}
  0x2f   : > { %608 = dma.hbm_to_vmem [thread:$0]  (!%p926_p0), %s920_s6, 128, %s922_s8, %s182_s10  }
  0x30   : > { %p1104_p1 = scmp.lt.s32.totalorder %s821_s17, 3  ;;  %p1105_p2 = scmp.ge.s32.totalorder %s821_s17, 1 }
  0x31   : > { %s583_s11 = sshll.u32 %s913_s28, 1  ;;  %s597_s18 = sshll.u32 %s817_s16, 5 }
  0x32   : > { %p962_p7 = pnand %p1105_p2, %p1104_p1  ;;  %s971_s22 = scalar_lea.hbm %s1094_s1, %s597_s18 }
  0x33   : > { %s209_s23 = scalar_lea.vmem [#allocation5], %s583_s11  ;;  %s206_s6 = scalar_lea.sflag [#allocation6], %s913_s28 }
  0x34   : > { %s1106_s7 = scalar_select %p962_p7, 1, 0 }
  0x35   : > { %s220_s29 = sshll.u32 %s209_s23, 4  ;;  %s705_s8 = scalar_lea.hbm %s971_s22, 32  ;;  %s221_s29 = int_to_ptr.vmem [resolvable:$true] %s220_s29 }
  0x36   : > { %p706_p9 = scmp.ne.s32.totalorder %s971_s22, %s705_s8  ;;  %s710_s4 = scalar_lea.hbm %s1094_s1, 64 }
  0x37   : > { %p711_p3 = scmp.lt.u32.totalorder %s971_s22, %s1094_s1  ;;  %p712_p6 = scmp.lt.u32.totalorder %s710_s4, %s705_s8 }
  0x38   : > { %p708_p11 = pnand %p706_p9, %p677_p5  ;;  %p714_p10 = scmp.lt.u32.totalorder %s705_s8, %s971_s22 }
  0x39   : > { %p713_p4 = por %p712_p6, %p711_p3 }
  0x3a   : > { %p709_p13 = pneg %p708_p11 }
  0x3b   : > { %p715_p12 = por %p714_p10, %p713_p4 }
  0x3d   : > { %p716_p1 = pnand %p715_p12, %p709_p13 }
  0x3f   : > { %719 = shalt.err (!%p716_p1)
}
  0x40   : > { %s720_s28 = scalar_lea.vmem %s221_s29, 32  ;;  %s824_s11 = smov [#allocation5]  }
  0x41   : > { %p721_p2 = scmp.ne.s32.totalorder %s221_s29, %s720_s28  ;;  %s725_s19 = sshll.u32 %s824_s11, 4  ;;  %s726_s19 = int_to_ptr.vmem [resolvable:$false] %s725_s19 }
  0x42   : > { %s727_s21 = scalar_lea.vmem %s726_s19, 64  ;;  %p728_p8 = scmp.lt.s32.totalorder %s221_s29, %s726_s19 }
  0x43   : > { %p723_p9 = pnand %p721_p2, %p677_p5  ;;  %p729_p7 = scmp.lt.s32.totalorder %s727_s21, %s720_s28 }
  0x45   : > { %p724_p11 = pneg %p723_p9  ;;  %p730_p3 = por %p729_p7, %p728_p8 }
  0x47   : > { %p731_p6 = pnand %p730_p3, %p724_p11 }
  0x49   : > { %734 = shalt.err (!%p731_p6)
}
  0x4a   : > { %611 = dma.hbm_to_vmem [thread:$0]  (!%p926_p0), %s971_s22, 32, %s221_s29, %s206_s6  }
  0x4b   : > { %p1107_p13 = scmp.ne.s32.totalorder %s1106_s7, 0 }
  0x4c   : > { %s996_s23 = sand.u32 (!%p1107_p13), 1, %s805_s13   ;;  %p1108_p5 = scmp.ne.s32.totalorder (!%p1107_p13), %s1100_s24, 0 }
  0x4d   : > { %243 = sbr.rel (%p1107_p13) target bundleno = 178 (0xb2), region = 32  ;;  %s587_s8 = sshll.u32 (!%p1107_p13), %s996_s23, 3 }
  0x4e   : > { %s246_s10 = scalar_lea.sflag (!%p1107_p13), [#allocation3], %s996_s23  ;;  %s249_s30 = scalar_lea.vmem (!%p1107_p13), [#allocation2], %s587_s8 }
  0x54   : > { %788 = dma.done.wait (%p1108_p5), %s246_s10, 128  }
  0x55   : > { %790 = vsyncadd (%p1108_p5), %s246_s10, 4294967168  ;;  %s588_s9 = sshll.u32 %s996_s23, 1  ;;  %s255_s7 = scalar_lea.sflag [#allocation6], %s996_s23 }
  0x56   : > { %s258_s22 = scalar_lea.vmem [#allocation5], %s588_s9 }
  0x57   : > { %792 = dma.done.wait (%p1108_p5), %s255_s7, 32  }
  0x58   : > { %794 = vsyncadd (%p1108_p5), %s255_s7, 4294967264  ;;  %v316_v0 = vlaneseq  ;;  %s1014_s29 = scalar_lea.vmem [#allocation7], %s588_s9  ;;  %v825_v2 = vmov 0.0   ;;  %vm327_vm1 = vcmask 1043456   ;;  %v321_v3 = vld [vmem:[%s249_s30] sm:$0xff]  ;;  %p303_p8 = scmp.lt.s32.totalorder %s813_s15, 1 }
  0x59   : > { %v325_v4 = vcombine.high %v321_v3, %v321_v3  ;;  %v328_v5 = vsel %vm327_vm1, %v321_v3, -inf  ;;  %v1021_v24 = vld [vmem:[%s258_s22] sm:$0x3]  ;;  %v826_v58 = vmov 1966171168   ;;  %s598_s28 = sshll.u32 %s813_s15, 5 }
  0x5a   : > { %vm1010_vm0 = vcmp.lt.s32.totalorder %v316_v0, 256  ;;  %v329_v6 = vrot.slane %v328_v5, 4  ;;  %v373_v20 = vshrl.u32 %v316_v0, 7  ;;  %v407_v59 = vunpack.c.l.s4 %v826_v58  ;;  %s304_s24 = scalar_select %p303_p8, %s813_s15, 1 }
  0x5b   : > { %320 = vst.msk [vmem:[%s1014_s29] sm:$0x3] %vm1010_vm0, %v825_v2  ;;  %v335_v7 = vsel %vm327_vm1, %v325_v4, -inf  ;;  %vm400_vm4 = vcmp.ne.s32.totalorder %v1021_v24, 255  ;;  %s447_s11 = sshll.u32 %s1014_s29, 4  ;;  %s1041_s8 = scalar_lea.hbm %s1096_s3, %s598_s28  ;;  %s1043_s11 = int_to_ptr.vmem [resolvable:$true] %s447_s11 }
  0x5c   : > { %v330_v8 = vmax.f32 %v328_v5, %v329_v6  ;;  %v336_v9 = vrot.slane %v335_v7, 4  ;;  %v376_v23 = vsub.s32 0, %v373_v20  ;;  %v380_v25 = vsub.s32 1, %v373_v20  ;;  %s590_s6 = sshll.u32 %s304_s24, 1  ;;  %s431_s10 = scalar_lea.sflag [#allocation4], %s996_s23 }
  0x5d   : > { %s309_s18 = scalar_lea.vmem %s1095_s2, %s590_s6  ;;  %s735_s30 = scalar_lea.vmem %s1043_s11, 32 }
  0x5e   : > { %v331_v10 = vrot.slane %v330_v8, 2  ;;  %v337_v11 = vmax.f32 %v335_v7, %v336_v9  ;;  %v377_v26 = vrot.slane %v1021_v24, %v376_v23  ;;  %v381_v27 = vrot.slane %v1021_v24, %v380_v25  ;;  %p736_p0 = scmp.ne.s32.totalorder %s1043_s11, %s735_s30  ;;  %p1111_p7 = scmp.ne.s32.totalorder %s1101_s25, 0 }
  0x5f   : > { %s827_s15 = smov [#allocation7]  }
  0x60   : > { %v332_v12 = vmax.f32 %v330_v8, %v331_v10  ;;  %v338_v13 = vrot.slane %v337_v11, 2  ;;  %vm382_vm2 = vcmp.eq.s32.totalorder %v373_v20, %v377_v26  ;;  %vm383_vm3 = vcmp.eq.s32.totalorder %v373_v20, %v381_v27  ;;  %p737_p4 = pnand %p736_p0, %p1111_p7  ;;  %s739_s9 = sshll.u32 %s827_s15, 4  ;;  %s740_s9 = int_to_ptr.vmem [resolvable:$false] %s739_s9 }
  0x61   : > { %v384_v28 = vsel %vm382_vm2, %v321_v3, 0.0  ;;  %v385_v32 = vsel %vm383_vm3, %v325_v4, 0.0  ;;  %v408_v4 = vunpack.c.0.s8 %v407_v59  ;;  %s741_s7 = scalar_lea.vmem %s740_s9, 64  ;;  %p742_p12 = scmp.lt.s32.totalorder %s1043_s11, %s740_s9 }
  0x62   : > { %v333_v14 = vrot.slane %v332_v12, 1  ;;  %v339_v15 = vmax.f32 %v337_v11, %v338_v13  ;;  %v386_v34 = vsel %vm327_vm1, %v384_v28, 0.0  ;;  %v393_v38 = vsel %vm327_vm1, %v385_v32, 0.0  ;;  %v323_v11 = vld [vmem:[%s309_s18] sm:$0x3]  ;;  %p738_p10 = pneg %p737_p4  ;;  %p743_p1 = scmp.lt.s32.totalorder %s741_s7, %s735_s30 }
  0x63   : > { %v387_v39 = vrot.slane %v386_v34, 4  ;;  %v394_v42 = vrot.slane %v393_v38, 4  ;;  %v411_v8 = vsub.s32 %v408_v4, %v373_v20 }
  0x64   : > { %v334_v16 = vmax.f32 %v332_v12, %v333_v14  ;;  %v340_v17 = vrot.slane %v339_v15, 1  ;;  %v423_v14 = vld [vmem:[%s1014_s29] sm:$0x3]  ;;  %p744_p2 = por %p743_p1, %p742_p12 }
  0x65   : > { %v388_v45 = vadd.f32 %v387_v39, %v386_v34  ;;  %v395_v48 = vadd.f32 %v394_v42, %v393_v38 }
  0x66   : > { %v341_v18 = vmax.f32 %v339_v15, %v340_v17  ;;  %p745_p9 = pnand %p744_p2, %p738_p10 }
  0x67   : > { %v389_v51 = vrot.slane %v388_v45, 2  ;;  %v396_v53 = vrot.slane %v395_v48, 2 }
  0x68   : > { %v344_v19 = vcombine.low %v334_v16, %v341_v18 }
  0x69   : > { %v390_v54 = vadd.f32 %v389_v51, %v388_v45  ;;  %v397_v55 = vadd.f32 %v396_v53, %v395_v48 }
  0x6a   : > { %v346_v21 = vsub.f32 %v321_v3, %v344_v19 }
  0x6b   : > { %v391_v56 = vrot.slane %v390_v54, 1  ;;  %v398_v57 = vrot.slane %v397_v55, 1 }
  0x6c   : > { %v347_v22 = vmul.f32 1.442695, %v346_v21 }
  0x6d   : > { %v392_v62 = vadd.f32 %v391_v56, %v390_v54  ;;  %v399_v3 = vadd.f32 %v398_v57, %v397_v55 }
  0x6e   : > { %669 = vpow2.f32 %v347_v22 }
  0x78   : > { %v670_v29 = vpop.eup %669 }
  0x79   : > { %v350_v30 = vcombine.high %v670_v29, %v670_v29  ;;  %v352_v31 = vsel %vm327_vm1, %v670_v29, 0.0 }
  0x7a   : > { %v353_v33 = vrot.slane %v352_v31, 4 }
  0x7b   : > { %v359_v35 = vsel %vm327_vm1, %v350_v30, 0.0 }
  0x7c   : > { %v354_v36 = vadd.f32 %v353_v33, %v352_v31  ;;  %v360_v37 = vrot.slane %v359_v35, 4 }
  0x7e   : > { %v355_v40 = vrot.slane %v354_v36, 2  ;;  %v361_v41 = vadd.f32 %v360_v37, %v359_v35 }
  0x80   : > { %v356_v43 = vadd.f32 %v355_v40, %v354_v36  ;;  %v362_v44 = vrot.slane %v361_v41, 2 }
  0x82   : > { %v357_v46 = vrot.slane %v356_v43, 1  ;;  %v363_v47 = vadd.f32 %v362_v44, %v361_v41 }
  0x84   : > { %v358_v49 = vadd.f32 %v357_v46, %v356_v43  ;;  %v364_v50 = vrot.slane %v363_v47, 1 }
  0x86   : > { %v365_v52 = vadd.f32 %v364_v50, %v363_v47  ;;  %671 = vlog2.f32 %v358_v49 }
  0x88   : > { %673 = vlog2.f32 %v365_v52 }
  0x90   : > { %v672_v60 = vpop.eup %671 }
  0x91   : > { %v367_v61 = vmul.f32 0.6931472, %v672_v60 }
  0x92   : > { %v674_v63 = vpop.eup %673 }
  0x93   : > { %v369_v0 = vmul.f32 0.6931472, %v674_v63  ;;  %v370_v2 = vadd.f32 %v367_v61, %v334_v16 }
  0x95   : > { %v371_v5 = vadd.f32 %v369_v0, %v341_v18  ;;  %v401_v6 = vsub.f32 %v370_v2, %v392_v62 }
  0x97   : > { %v402_v7 = vsub.f32 %v371_v5, %v399_v3 }
  0x99   : > { %v405_v9 = vcombine.low %v401_v6, %v402_v7 }
  0x9b   : > { %v412_v10 = vrot.slane %v405_v9, %v411_v8 }
  0x9d   : > { %v419_v12 = vrot.slane %v412_v10, %v411_v8 }
  0x9f   : > { %v421_v13 = vsel %vm400_vm4, %v419_v12, 0.0 }
  0xa0   : > { %v422_v15 = vmul.f32 %v421_v13, %v323_v11 }
  0xa2   : > { %v424_v16 = vadd.f32 %v423_v14, %v422_v15 }
  0xa4   : > { %429 = vst.msk [vmem:[%s1014_s29] sm:$0x3] %vm1010_vm0, %v424_v16 }
  0xa5   : > { %748 = shalt.err (!%p745_p9)
}
  0xa6   : > { %s749_s23 = scalar_lea.hbm %s1041_s8, 32  ;;  %s753_s24 = scalar_lea.hbm %s1096_s3, 64 }
  0xa7   : > { %p750_p11 = scmp.ne.s32.totalorder %s1041_s8, %s749_s23  ;;  %p754_p13 = scmp.lt.u32.totalorder %s1041_s8, %s1096_s3 }
  0xa8   : > { %p755_p5 = scmp.lt.u32.totalorder %s753_s24, %s749_s23  ;;  %p757_p0 = scmp.lt.u32.totalorder %s749_s23, %s1041_s8 }
  0xa9   : > { %p751_p3 = pnand %p750_p11, %p1111_p7 }
  0xaa   : > { %p756_p8 = por %p755_p5, %p754_p13 }
  0xab   : > { %p752_p6 = pneg %p751_p3 }
  0xac   : > { %p758_p4 = por %p757_p0, %p756_p8 }
  0xae   : > { %p759_p10 = pnand %p758_p4, %p752_p6 }
  0xb0   : > { %762 = shalt.err (!%p759_p10)
}
  0xb1   : > { %603 = dma.vmem_to_hbm [thread:$0]  (%p1111_p7), %s1043_s11, 32, %s1041_s8, %s431_s10  }
  0xb2 PF: > { %s459_s5 = sand.u32 1, %s801_s12   ;;  %p1112_p12 = scmp.ne.s32.totalorder %s1102_s27, 0 }
  0xb3   : > { %p1113_p1 = scmp.ge.s32.totalorder %s821_s17, 2  ;;  %s460_s18 = scalar_lea.sflag [#allocation4], %s459_s5 }
  0xb5   : > { %p613_p2 = pnand %p1113_p1, %p1112_p12 }
  0xb7   : > { %796 = dma.done.wait (!%p613_p2), %s460_s18, 32  }
  0xb8   : > { %798 = vsyncadd (!%p613_p2), %s460_s18, 4294967264  ;;  %s22_s17 = sadd.s32 1, %s821_s17   ;;  %s1114_s12 = smov %s805_s13 }
  0xb9   : > { %p19_p9 = scmp.ge.s32.totalorder %s22_s17, 4   ;;  %s1115_s13 = smov %s809_s14 }
  0xba   : > { %s1116_s14 = smov %s904_s26  ;;  %s1117_s15 = smov %s817_s16 }
  0xbb   : > { %s1118_s16 = smov %s1120_s20  ;;  %21 = sbr.rel (!%p19_p9) target bundleno = 8 (0x8), region = 97 }
  0xc2   :  { %465 = vsyncpa [#allocation3], 1 }
  0xc3   :  { %467 = vsyncpa [#allocation3 + $0x1], 1 }
  0xc4   :  { %468 = vsyncpa [#allocation6], 1 }
  0xc5   :  { %470 = vsyncpa [#allocation6 + $0x1], 1 }
  0xc6   :  { %471 = vsyncpa [#allocation4], 1 }
  0xc7   :  { %473 = vsyncpa [#allocation4 + $0x1], 1 }

</bundles_post_ra>
